<compile_context>
chip_gen: v6e
topology: v6e:2x2x1
jax: 0.10.0
libtpu: 0.0.40
codegen_flags: <defaults>
</compile_context>

<pallas_src>
import functools

import jax
import jax.numpy as jnp
from jax.experimental import pallas as pl
from jax.experimental.pallas import tpu as pltpu


def lstm_kernel(x_ref, wih_ref, whh_ref, b_ref, wfc_ref, bfc_ref,
                out_ref, gx_ref, *, seq_len, batch_p, hidden, unroll):
    """Fused LSTM: one kernel invocation runs the entire sequence.

    x_ref   : (T*Bp, D)   time-major, batch-padded, flattened inputs (bf16, VMEM)
    gx_ref  : (T*Bp, 4H)  scratch holding the hoisted input projection (f32)
    out_ref : (Bp, O)     final classifier output
    h / c   : carried as fori_loop values (vreg-resident, f32)
    """
    H = hidden
    Bp = batch_p

    # --- Hoisted input projection: one bf16 MXU matmul for all time steps. ---
    gx_ref[...] = (
        jnp.dot(x_ref[...], wih_ref[...], preferred_element_type=jnp.float32)
        + b_ref[...]
    )

    whh = whh_ref[...]  # bf16; loaded once and held across the recurrence

    # --- Loop-invariant gate masks / scales (hoisted: no CSE of broadcasts). ---
    lane = jax.lax.broadcasted_iota(jnp.int32, (Bp, 4 * H), 1)
    is_g = jnp.logical_and(lane >= 2 * H, lane < 3 * H)
    pre_scale = jnp.where(is_g, 2.0, 1.0).astype(jnp.float32)   # 2x on g lanes
    post_scale = jnp.where(is_g, 2.0, 1.0).astype(jnp.float32)
    post_shift = jnp.where(is_g, -1.0, 0.0).astype(jnp.float32)

    def step(t, carry):
        h, c = carry                                     # (Bp, H) f32, in vregs
        row = pl.multiple_of(t * Bp, 8)                  # sublane-aligned slice
        gates = (gx_ref[pl.ds(row, Bp), :]
                 + jnp.dot(h.astype(jnp.bfloat16), whh,
                           preferred_element_type=jnp.float32))  # (Bp, 4H) f32

        # Single full-vreg sigmoid; tanh(x) = 2*sigmoid(2x) - 1 on the g lanes.
        act = post_scale * jax.nn.sigmoid(gates * pre_scale) + post_shift

        i_g = act[:, 0 * H:1 * H]
        f_g = act[:, 1 * H:2 * H]
        g_g = act[:, 2 * H:3 * H]
        o_g = act[:, 3 * H:4 * H]

        c_new = f_g * c + i_g * g_g
        h_new = o_g * jnp.tanh(c_new)
        return (h_new, c_new)

    h0 = jnp.zeros((Bp, H), jnp.float32)
    c0 = jnp.zeros((Bp, H), jnp.float32)
    h_final, _ = jax.lax.fori_loop(0, seq_len, step, (h0, c0), unroll=unroll)

    # Final Linear head on the last hidden state (tiny; kept in f32).
    # (O << 128 -> masked vst; single store, negligible at these shapes.)
    out_ref[...] = (
        jnp.dot(h_final, wfc_ref[...], preferred_element_type=jnp.float32)
        + bfc_ref[...]
    ).astype(out_ref.dtype)


def wrapped_model_forward(x_btd, params):
    """WrappedModel.forward: delegates to the wrapped LSTM-classifier module."""
    w_ih, w_hh, b, w_fc, b_fc = params
    B, T, D = x_btd.shape
    H = w_hh.shape[0]
    O = w_fc.shape[1]

    # Pad batch to a full 8-sublane group and flatten to time-major (T*Bp, D).
    Bp = max(8, ((B + 7) // 8) * 8)
    x_tbd = jnp.transpose(x_btd, (1, 0, 2)).astype(jnp.float32)   # (T, B, D)
    x_pad = jnp.zeros((T, Bp, D), jnp.float32).at[:, :B, :].set(x_tbd)
    x_flat = x_pad.reshape(T * Bp, D).astype(jnp.bfloat16)        # bf16 MXU input

    # bf16 weights for the MXU; accumulation stays f32 inside the kernel.
    w_ih_b = w_ih.astype(jnp.bfloat16)
    w_hh_b = w_hh.astype(jnp.bfloat16)

    kernel = functools.partial(lstm_kernel, seq_len=T, batch_p=Bp, hidden=H,
                               unroll=min(T, 8))

    out_p = pl.pallas_call(
        kernel,
        out_shape=jax.ShapeDtypeStruct((Bp, O), jnp.float32),
        grid_spec=pltpu.PrefetchScalarGridSpec(
            num_scalar_prefetch=0,
            grid=(1,),  # single invocation: the time loop is fused inside
            in_specs=[
                pl.BlockSpec((T * Bp, D), lambda i: (0, 0)),      # x (all steps)
                pl.BlockSpec((D, 4 * H), lambda i: (0, 0)),       # W_ih (bf16)
                pl.BlockSpec((H, 4 * H), lambda i: (0, 0)),       # W_hh (bf16)
                pl.BlockSpec((1, 4 * H), lambda i: (0, 0)),       # b_ih + b_hh
                pl.BlockSpec((H, O), lambda i: (0, 0)),           # W_fc
                pl.BlockSpec((1, O), lambda i: (0, 0)),           # b_fc
            ],
            out_specs=pl.BlockSpec((Bp, O), lambda i: (0, 0)),
            scratch_shapes=[
                pltpu.VMEM((T * Bp, 4 * H), jnp.float32),   # hoisted x-gates
            ],
        ),
        compiler_params=pltpu.CompilerParams(
            dimension_semantics=("arbitrary",),
        ),
    )(x_flat, w_ih_b, w_hh_b, b, w_fc, b_fc)

    return out_p[:B]


def reference_forward(x_btd, params):
    """Pure-JAX f32 reference of the same LSTM + Linear head (PyTorch semantics)."""
    w_ih, w_hh, b, w_fc, b_fc = params
    B, T, D = x_btd.shape
    H = w_hh.shape[0]
    h = jnp.zeros((B, H), jnp.float32)
    c = jnp.zeros((B, H), jnp.float32)
    for t in range(T):
        gates = x_btd[:, t, :] @ w_ih + h @ w_hh + b
        i_g = jax.nn.sigmoid(gates[:, 0 * H:1 * H])
        f_g = jax.nn.sigmoid(gates[:, 1 * H:2 * H])
        g_g = jnp.tanh(gates[:, 2 * H:3 * H])
        o_g = jax.nn.sigmoid(gates[:, 3 * H:4 * H])
        c = f_g * c + i_g * g_g
        h = o_g * jnp.tanh(c)
    return h @ w_fc + b_fc


def make_params(key, D, H, O):
    """Deterministic synthetic weights (no checkpoint load)."""
    k1, k2, k3, k4, k5, k6 = jax.random.split(key, 6)
    scale = 0.1
    w_ih = scale * jax.random.normal(k1, (D, 4 * H), jnp.float32)
    w_hh = scale * jax.random.normal(k2, (H, 4 * H), jnp.float32)
    b_ih = scale * jax.random.normal(k3, (1, 4 * H), jnp.float32)
    b_hh = scale * jax.random.normal(k4, (1, 4 * H), jnp.float32)
    b = b_ih + b_hh
    w_fc = scale * jax.random.normal(k5, (H, O), jnp.float32)
    b_fc = scale * jax.random.normal(k6, (1, O), jnp.float32)
    return (w_ih, w_hh, b, w_fc, b_fc)


if __name__ == "__main__":
    B, T, D, H, O = 2, 8, 16, 32, 4
    key = jax.random.PRNGKey(0)
    kx, kp = jax.random.split(key)
    x = jax.random.normal(kx, (B, T, D), jnp.float32)
    params = make_params(kp, D, H, O)

    out = wrapped_model_forward(x, params)
    out = jax.block_until_ready(out)

    ref = jax.block_until_ready(reference_forward(x, params))
    assert out.shape == (B, O)
    # Tolerance relaxed vs the pure-f32 version: the kernel deliberately feeds
    # the MXU bf16 operands (f32 accumulation) per the perf review.  Remove the
    # bf16 casts in wrapped_model_forward for exact f32 parity.
    assert jnp.allclose(out, ref, atol=2e-2, rtol=2e-2), (out, ref)

    print("KERNEL_OK")
</pallas_src>

<mosaic_0001>
module attributes {stable_mosaic.version = 11 : i64} {
  func.func @lstm_kernel(%arg0: i32, %arg1: memref<64x16xbf16, #tpu.memory_space<vmem>>, %arg2: memref<16x128xbf16, #tpu.memory_space<vmem>>, %arg3: memref<32x128xbf16, #tpu.memory_space<vmem>>, %arg4: memref<1x128xf32, #tpu.memory_space<vmem>>, %arg5: memref<32x4xf32, #tpu.memory_space<vmem>>, %arg6: memref<1x4xf32, #tpu.memory_space<vmem>>, %arg7: memref<8x4xf32, #tpu.memory_space<vmem>>, %arg8: memref<64x128xf32, #tpu.memory_space<vmem>>) attributes {dimension_semantics = [#tpu.dimension_semantics<arbitrary>], iteration_bounds = array<i64: 1>, scalar_prefetch = 0 : i64, scratch_operands = 1 : i64, tpu.core_type = #tpu.core_type<tc>, window_params = [{pipeline_mode = #tpu.pipeline_mode<synchronous>, transform_indices = @transform_0, window_bounds = array<i64: 64, 16>}, {pipeline_mode = #tpu.pipeline_mode<synchronous>, transform_indices = @transform_1, window_bounds = array<i64: 16, 128>}, {pipeline_mode = #tpu.pipeline_mode<synchronous>, transform_indices = @transform_2, window_bounds = array<i64: 32, 128>}, {pipeline_mode = #tpu.pipeline_mode<synchronous>, transform_indices = @transform_3, window_bounds = array<i64: 1, 128>}, {pipeline_mode = #tpu.pipeline_mode<synchronous>, transform_indices = @transform_4, window_bounds = array<i64: 32, 4>}, {pipeline_mode = #tpu.pipeline_mode<synchronous>, transform_indices = @transform_5, window_bounds = array<i64: 1, 4>}, {pipeline_mode = #tpu.pipeline_mode<synchronous>, transform_indices = @transform_6, window_bounds = array<i64: 8, 4>}]} {
    %c0 = arith.constant 0 : index
    %c0_0 = arith.constant 0 : index
    %0 = vector.load %arg1[%c0, %c0_0] : memref<64x16xbf16, #tpu.memory_space<vmem>>, vector<64x16xbf16>
    %c0_1 = arith.constant 0 : index
    %c0_2 = arith.constant 0 : index
    %1 = vector.load %arg2[%c0_1, %c0_2] : memref<16x128xbf16, #tpu.memory_space<vmem>>, vector<16x128xbf16>
    %cst = arith.constant dense<0.000000e+00> : vector<64x128xf32>
    %2 = tpu.matmul %0, %1, %cst {dimension_numbers = #tpu.dot_dimension_numbers<[1], [0], [0], [1], [0, 0, 1, 1], [], []>} : vector<64x16xbf16>, vector<16x128xbf16>, vector<64x128xf32> -> vector<64x128xf32>
    %c0_3 = arith.constant 0 : index
    %c0_4 = arith.constant 0 : index
    %3 = vector.load %arg4[%c0_3, %c0_4] : memref<1x128xf32, #tpu.memory_space<vmem>>, vector<1x128xf32>
    %4 = vector.broadcast %3 : vector<1x128xf32> to vector<64x128xf32>
    %5 = arith.addf %2, %4 : vector<64x128xf32>
    %c0_5 = arith.constant 0 : index
    %c0_6 = arith.constant 0 : index
    %6 = vector.load %arg8[%c0_5, %c0_6] : memref<64x128xf32, #tpu.memory_space<vmem>>, vector<64x128xf32>
    tpu.vector_store %arg8[%c0_5, %c0_6], %5 {strides = array<i32>} : memref<64x128xf32, #tpu.memory_space<vmem>>, vector<64x128xf32>,
    %c0_7 = arith.constant 0 : index
    %c0_8 = arith.constant 0 : index
    %7 = vector.load %arg3[%c0_7, %c0_8] : memref<32x128xbf16, #tpu.memory_space<vmem>>, vector<32x128xbf16>
    %8 = tpu.iota {dimensions = array<i32: 1>} : vector<8x128xi32>
    %c64_i32 = arith.constant 64 : i32
    %9 = vector.broadcast %c64_i32 : i32 to vector<8x128xi32>
    %10 = arith.cmpi sge, %8, %9 : vector<8x128xi32>
    %c96_i32 = arith.constant 96 : i32
    %11 = vector.broadcast %c96_i32 : i32 to vector<8x128xi32>
    %12 = arith.cmpi slt, %8, %11 : vector<8x128xi32>
    %13 = arith.andi %10, %12 : vector<8x128xi1>
    %cst_9 = arith.constant 2.000000e+00 : f32
    %cst_10 = arith.constant 1.000000e+00 : f32
    %14 = vector.broadcast %cst_9 : f32 to vector<8x128xf32>
    %15 = vector.broadcast %cst_10 : f32 to vector<8x128xf32>
    %16 = arith.select %13, %14, %15 : vector<8x128xi1>, vector<8x128xf32>
    %cst_11 = arith.constant 2.000000e+00 : f32
    %cst_12 = arith.constant 1.000000e+00 : f32
    %17 = vector.broadcast %cst_11 : f32 to vector<8x128xf32>
    %18 = vector.broadcast %cst_12 : f32 to vector<8x128xf32>
    %19 = arith.select %13, %17, %18 : vector<8x128xi1>, vector<8x128xf32>
    %cst_13 = arith.constant -1.000000e+00 : f32
    %cst_14 = arith.constant 0.000000e+00 : f32
    %20 = vector.broadcast %cst_13 : f32 to vector<8x128xf32>
    %21 = vector.broadcast %cst_14 : f32 to vector<8x128xf32>
    %22 = arith.select %13, %20, %21 : vector<8x128xi1>, vector<8x128xf32>
    %cst_15 = arith.constant 0.000000e+00 : f32
    %23 = vector.broadcast %cst_15 : f32 to vector<8x32xf32>
    %cst_16 = arith.constant 0.000000e+00 : f32
    %24 = vector.broadcast %cst_16 : f32 to vector<8x32xf32>
    %c0_i32 = arith.constant 0 : i32
    %c8_i32 = arith.constant 8 : i32
    %25 = arith.muli %c0_i32, %c8_i32 : i32
    %26 = tpu.assume_multiple %25, 8 : i32
    %27 = arith.index_cast %26 : i32 to index
    %c0_17 = arith.constant 0 : index
    %28 = vector.load %arg8[%27, %c0_17] : memref<64x128xf32, #tpu.memory_space<vmem>>, vector<8x128xf32>
    %29 = arith.truncf %23 : vector<8x32xf32> to vector<8x32xbf16>
    %cst_18 = arith.constant dense<0.000000e+00> : vector<8x128xf32>
    %30 = tpu.matmul %29, %7, %cst_18 {dimension_numbers = #tpu.dot_dimension_numbers<[1], [0], [0], [1], [0, 0, 1, 1], [], []>} : vector<8x32xbf16>, vector<32x128xbf16>, vector<8x128xf32> -> vector<8x128xf32>
    %31 = arith.addf %28, %30 : vector<8x128xf32>
    %32 = arith.mulf %31, %16 : vector<8x128xf32>
    %33 = arith.negf %32 : vector<8x128xf32>
    %34 = math.exp %33 : vector<8x128xf32>
    %cst_19 = arith.constant 1.000000e+00 : f32
    %35 = vector.broadcast %cst_19 : f32 to vector<8x128xf32>
    %36 = arith.addf %35, %34 : vector<8x128xf32>
    %37 = arith.divf %35, %36 : vector<8x128xf32>
    %38 = arith.mulf %19, %37 : vector<8x128xf32>
    %39 = arith.addf %38, %22 : vector<8x128xf32>
    %40 = vector.extract_strided_slice %39 {offsets = [0, 0], sizes = [8, 32], strides = [1, 1]} : vector<8x128xf32> to vector<8x32xf32>
    %41 = vector.extract_strided_slice %39 {offsets = [0, 32], sizes = [8, 32], strides = [1, 1]} : vector<8x128xf32> to vector<8x32xf32>
    %42 = vector.extract_strided_slice %39 {offsets = [0, 64], sizes = [8, 32], strides = [1, 1]} : vector<8x128xf32> to vector<8x32xf32>
    %43 = vector.extract_strided_slice %39 {offsets = [0, 96], sizes = [8, 32], strides = [1, 1]} : vector<8x128xf32> to vector<8x32xf32>
    %44 = arith.mulf %41, %24 : vector<8x32xf32>
    %45 = arith.mulf %40, %42 : vector<8x32xf32>
    %46 = arith.addf %44, %45 : vector<8x32xf32>
    %47 = math.tanh %46 : vector<8x32xf32>
    %48 = arith.mulf %43, %47 : vector<8x32xf32>
    %c1_i32 = arith.constant 1 : i32
    %c8_i32_20 = arith.constant 8 : i32
    %49 = arith.muli %c1_i32, %c8_i32_20 : i32
    %50 = tpu.assume_multiple %49, 8 : i32
    %51 = arith.index_cast %50 : i32 to index
    %c0_21 = arith.constant 0 : index
    %52 = vector.load %arg8[%51, %c0_21] : memref<64x128xf32, #tpu.memory_space<vmem>>, vector<8x128xf32>
    %53 = arith.truncf %48 : vector<8x32xf32> to vector<8x32xbf16>
    %cst_22 = arith.constant dense<0.000000e+00> : vector<8x128xf32>
    %54 = tpu.matmul %53, %7, %cst_22 {dimension_numbers = #tpu.dot_dimension_numbers<[1], [0], [0], [1], [0, 0, 1, 1], [], []>} : vector<8x32xbf16>, vector<32x128xbf16>, vector<8x128xf32> -> vector<8x128xf32>
    %55 = arith.addf %52, %54 : vector<8x128xf32>
    %56 = arith.mulf %55, %16 : vector<8x128xf32>
    %57 = arith.negf %56 : vector<8x128xf32>
    %58 = math.exp %57 : vector<8x128xf32>
    %cst_23 = arith.constant 1.000000e+00 : f32
    %59 = vector.broadcast %cst_23 : f32 to vector<8x128xf32>
    %60 = arith.addf %59, %58 : vector<8x128xf32>
    %61 = arith.divf %59, %60 : vector<8x128xf32>
    %62 = arith.mulf %19, %61 : vector<8x128xf32>
    %63 = arith.addf %62, %22 : vector<8x128xf32>
    %64 = vector.extract_strided_slice %63 {offsets = [0, 0], sizes = [8, 32], strides = [1, 1]} : vector<8x128xf32> to vector<8x32xf32>
    %65 = vector.extract_strided_slice %63 {offsets = [0, 32], sizes = [8, 32], strides = [1, 1]} : vector<8x128xf32> to vector<8x32xf32>
    %66 = vector.extract_strided_slice %63 {offsets = [0, 64], sizes = [8, 32], strides = [1, 1]} : vector<8x128xf32> to vector<8x32xf32>
    %67 = vector.extract_strided_slice %63 {offsets = [0, 96], sizes = [8, 32], strides = [1, 1]} : vector<8x128xf32> to vector<8x32xf32>
    %68 = arith.mulf %65, %46 : vector<8x32xf32>
    %69 = arith.mulf %64, %66 : vector<8x32xf32>
    %70 = arith.addf %68, %69 : vector<8x32xf32>
    %71 = math.tanh %70 : vector<8x32xf32>
    %72 = arith.mulf %67, %71 : vector<8x32xf32>
    %c2_i32 = arith.constant 2 : i32
    %c8_i32_24 = arith.constant 8 : i32
    %73 = arith.muli %c2_i32, %c8_i32_24 : i32
    %74 = tpu.assume_multiple %73, 8 : i32
    %75 = arith.index_cast %74 : i32 to index
    %c0_25 = arith.constant 0 : index
    %76 = vector.load %arg8[%75, %c0_25] : memref<64x128xf32, #tpu.memory_space<vmem>>, vector<8x128xf32>
    %77 = arith.truncf %72 : vector<8x32xf32> to vector<8x32xbf16>
    %cst_26 = arith.constant dense<0.000000e+00> : vector<8x128xf32>
    %78 = tpu.matmul %77, %7, %cst_26 {dimension_numbers = #tpu.dot_dimension_numbers<[1], [0], [0], [1], [0, 0, 1, 1], [], []>} : vector<8x32xbf16>, vector<32x128xbf16>, vector<8x128xf32> -> vector<8x128xf32>
    %79 = arith.addf %76, %78 : vector<8x128xf32>
    %80 = arith.mulf %79, %16 : vector<8x128xf32>
    %81 = arith.negf %80 : vector<8x128xf32>
    %82 = math.exp %81 : vector<8x128xf32>
    %cst_27 = arith.constant 1.000000e+00 : f32
    %83 = vector.broadcast %cst_27 : f32 to vector<8x128xf32>
    %84 = arith.addf %83, %82 : vector<8x128xf32>
    %85 = arith.divf %83, %84 : vector<8x128xf32>
    %86 = arith.mulf %19, %85 : vector<8x128xf32>
    %87 = arith.addf %86, %22 : vector<8x128xf32>
    %88 = vector.extract_strided_slice %87 {offsets = [0, 0], sizes = [8, 32], strides = [1, 1]} : vector<8x128xf32> to vector<8x32xf32>
    %89 = vector.extract_strided_slice %87 {offsets = [0, 32], sizes = [8, 32], strides = [1, 1]} : vector<8x128xf32> to vector<8x32xf32>
    %90 = vector.extract_strided_slice %87 {offsets = [0, 64], sizes = [8, 32], strides = [1, 1]} : vector<8x128xf32> to vector<8x32xf32>
    %91 = vector.extract_strided_slice %87 {offsets = [0, 96], sizes = [8, 32], strides = [1, 1]} : vector<8x128xf32> to vector<8x32xf32>
    %92 = arith.mulf %89, %70 : vector<8x32xf32>
    %93 = arith.mulf %88, %90 : vector<8x32xf32>
    %94 = arith.addf %92, %93 : vector<8x32xf32>
    %95 = math.tanh %94 : vector<8x32xf32>
    %96 = arith.mulf %91, %95 : vector<8x32xf32>
    %c3_i32 = arith.constant 3 : i32
    %c8_i32_28 = arith.constant 8 : i32
    %97 = arith.muli %c3_i32, %c8_i32_28 : i32
    %98 = tpu.assume_multiple %97, 8 : i32
    %99 = arith.index_cast %98 : i32 to index
    %c0_29 = arith.constant 0 : index
    %100 = vector.load %arg8[%99, %c0_29] : memref<64x128xf32, #tpu.memory_space<vmem>>, vector<8x128xf32>
    %101 = arith.truncf %96 : vector<8x32xf32> to vector<8x32xbf16>
    %cst_30 = arith.constant dense<0.000000e+00> : vector<8x128xf32>
    %102 = tpu.matmul %101, %7, %cst_30 {dimension_numbers = #tpu.dot_dimension_numbers<[1], [0], [0], [1], [0, 0, 1, 1], [], []>} : vector<8x32xbf16>, vector<32x128xbf16>, vector<8x128xf32> -> vector<8x128xf32>
    %103 = arith.addf %100, %102 : vector<8x128xf32>
    %104 = arith.mulf %103, %16 : vector<8x128xf32>
    %105 = arith.negf %104 : vector<8x128xf32>
    %106 = math.exp %105 : vector<8x128xf32>
    %cst_31 = arith.constant 1.000000e+00 : f32
    %107 = vector.broadcast %cst_31 : f32 to vector<8x128xf32>
    %108 = arith.addf %107, %106 : vector<8x128xf32>
    %109 = arith.divf %107, %108 : vector<8x128xf32>
    %110 = arith.mulf %19, %109 : vector<8x128xf32>
    %111 = arith.addf %110, %22 : vector<8x128xf32>
    %112 = vector.extract_strided_slice %111 {offsets = [0, 0], sizes = [8, 32], strides = [1, 1]} : vector<8x128xf32> to vector<8x32xf32>
    %113 = vector.extract_strided_slice %111 {offsets = [0, 32], sizes = [8, 32], strides = [1, 1]} : vector<8x128xf32> to vector<8x32xf32>
    %114 = vector.extract_strided_slice %111 {offsets = [0, 64], sizes = [8, 32], strides = [1, 1]} : vector<8x128xf32> to vector<8x32xf32>
    %115 = vector.extract_strided_slice %111 {offsets = [0, 96], sizes = [8, 32], strides = [1, 1]} : vector<8x128xf32> to vector<8x32xf32>
    %116 = arith.mulf %113, %94 : vector<8x32xf32>
    %117 = arith.mulf %112, %114 : vector<8x32xf32>
    %118 = arith.addf %116, %117 : vector<8x32xf32>
    %119 = math.tanh %118 : vector<8x32xf32>
    %120 = arith.mulf %115, %119 : vector<8x32xf32>
    %c4_i32 = arith.constant 4 : i32
    %c8_i32_32 = arith.constant 8 : i32
    %121 = arith.muli %c4_i32, %c8_i32_32 : i32
    %122 = tpu.assume_multiple %121, 8 : i32
    %123 = arith.index_cast %122 : i32 to index
    %c0_33 = arith.constant 0 : index
    %124 = vector.load %arg8[%123, %c0_33] : memref<64x128xf32, #tpu.memory_space<vmem>>, vector<8x128xf32>
    %125 = arith.truncf %120 : vector<8x32xf32> to vector<8x32xbf16>
    %cst_34 = arith.constant dense<0.000000e+00> : vector<8x128xf32>
    %126 = tpu.matmul %125, %7, %cst_34 {dimension_numbers = #tpu.dot_dimension_numbers<[1], [0], [0], [1], [0, 0, 1, 1], [], []>} : vector<8x32xbf16>, vector<32x128xbf16>, vector<8x128xf32> -> vector<8x128xf32>
    %127 = arith.addf %124, %126 : vector<8x128xf32>
    %128 = arith.mulf %127, %16 : vector<8x128xf32>
    %129 = arith.negf %128 : vector<8x128xf32>
    %130 = math.exp %129 : vector<8x128xf32>
    %cst_35 = arith.constant 1.000000e+00 : f32
    %131 = vector.broadcast %cst_35 : f32 to vector<8x128xf32>
    %132 = arith.addf %131, %130 : vector<8x128xf32>
    %133 = arith.divf %131, %132 : vector<8x128xf32>
    %134 = arith.mulf %19, %133 : vector<8x128xf32>
    %135 = arith.addf %134, %22 : vector<8x128xf32>
    %136 = vector.extract_strided_slice %135 {offsets = [0, 0], sizes = [8, 32], strides = [1, 1]} : vector<8x128xf32> to vector<8x32xf32>
    %137 = vector.extract_strided_slice %135 {offsets = [0, 32], sizes = [8, 32], strides = [1, 1]} : vector<8x128xf32> to vector<8x32xf32>
    %138 = vector.extract_strided_slice %135 {offsets = [0, 64], sizes = [8, 32], strides = [1, 1]} : vector<8x128xf32> to vector<8x32xf32>
    %139 = vector.extract_strided_slice %135 {offsets = [0, 96], sizes = [8, 32], strides = [1, 1]} : vector<8x128xf32> to vector<8x32xf32>
    %140 = arith.mulf %137, %118 : vector<8x32xf32>
    %141 = arith.mulf %136, %138 : vector<8x32xf32>
    %142 = arith.addf %140, %141 : vector<8x32xf32>
    %143 = math.tanh %142 : vector<8x32xf32>
    %144 = arith.mulf %139, %143 : vector<8x32xf32>
    %c5_i32 = arith.constant 5 : i32
    %c8_i32_36 = arith.constant 8 : i32
    %145 = arith.muli %c5_i32, %c8_i32_36 : i32
    %146 = tpu.assume_multiple %145, 8 : i32
    %147 = arith.index_cast %146 : i32 to index
    %c0_37 = arith.constant 0 : index
    %148 = vector.load %arg8[%147, %c0_37] : memref<64x128xf32, #tpu.memory_space<vmem>>, vector<8x128xf32>
    %149 = arith.truncf %144 : vector<8x32xf32> to vector<8x32xbf16>
    %cst_38 = arith.constant dense<0.000000e+00> : vector<8x128xf32>
    %150 = tpu.matmul %149, %7, %cst_38 {dimension_numbers = #tpu.dot_dimension_numbers<[1], [0], [0], [1], [0, 0, 1, 1], [], []>} : vector<8x32xbf16>, vector<32x128xbf16>, vector<8x128xf32> -> vector<8x128xf32>
    %151 = arith.addf %148, %150 : vector<8x128xf32>
    %152 = arith.mulf %151, %16 : vector<8x128xf32>
    %153 = arith.negf %152 : vector<8x128xf32>
    %154 = math.exp %153 : vector<8x128xf32>
    %cst_39 = arith.constant 1.000000e+00 : f32
    %155 = vector.broadcast %cst_39 : f32 to vector<8x128xf32>
    %156 = arith.addf %155, %154 : vector<8x128xf32>
    %157 = arith.divf %155, %156 : vector<8x128xf32>
    %158 = arith.mulf %19, %157 : vector<8x128xf32>
    %159 = arith.addf %158, %22 : vector<8x128xf32>
    %160 = vector.extract_strided_slice %159 {offsets = [0, 0], sizes = [8, 32], strides = [1, 1]} : vector<8x128xf32> to vector<8x32xf32>
    %161 = vector.extract_strided_slice %159 {offsets = [0, 32], sizes = [8, 32], strides = [1, 1]} : vector<8x128xf32> to vector<8x32xf32>
    %162 = vector.extract_strided_slice %159 {offsets = [0, 64], sizes = [8, 32], strides = [1, 1]} : vector<8x128xf32> to vector<8x32xf32>
    %163 = vector.extract_strided_slice %159 {offsets = [0, 96], sizes = [8, 32], strides = [1, 1]} : vector<8x128xf32> to vector<8x32xf32>
    %164 = arith.mulf %161, %142 : vector<8x32xf32>
    %165 = arith.mulf %160, %162 : vector<8x32xf32>
    %166 = arith.addf %164, %165 : vector<8x32xf32>
    %167 = math.tanh %166 : vector<8x32xf32>
    %168 = arith.mulf %163, %167 : vector<8x32xf32>
    %c6_i32 = arith.constant 6 : i32
    %c8_i32_40 = arith.constant 8 : i32
    %169 = arith.muli %c6_i32, %c8_i32_40 : i32
    %170 = tpu.assume_multiple %169, 8 : i32
    %171 = arith.index_cast %170 : i32 to index
    %c0_41 = arith.constant 0 : index
    %172 = vector.load %arg8[%171, %c0_41] : memref<64x128xf32, #tpu.memory_space<vmem>>, vector<8x128xf32>
    %173 = arith.truncf %168 : vector<8x32xf32> to vector<8x32xbf16>
    %cst_42 = arith.constant dense<0.000000e+00> : vector<8x128xf32>
    %174 = tpu.matmul %173, %7, %cst_42 {dimension_numbers = #tpu.dot_dimension_numbers<[1], [0], [0], [1], [0, 0, 1, 1], [], []>} : vector<8x32xbf16>, vector<32x128xbf16>, vector<8x128xf32> -> vector<8x128xf32>
    %175 = arith.addf %172, %174 : vector<8x128xf32>
    %176 = arith.mulf %175, %16 : vector<8x128xf32>
    %177 = arith.negf %176 : vector<8x128xf32>
    %178 = math.exp %177 : vector<8x128xf32>
    %cst_43 = arith.constant 1.000000e+00 : f32
    %179 = vector.broadcast %cst_43 : f32 to vector<8x128xf32>
    %180 = arith.addf %179, %178 : vector<8x128xf32>
    %181 = arith.divf %179, %180 : vector<8x128xf32>
    %182 = arith.mulf %19, %181 : vector<8x128xf32>
    %183 = arith.addf %182, %22 : vector<8x128xf32>
    %184 = vector.extract_strided_slice %183 {offsets = [0, 0], sizes = [8, 32], strides = [1, 1]} : vector<8x128xf32> to vector<8x32xf32>
    %185 = vector.extract_strided_slice %183 {offsets = [0, 32], sizes = [8, 32], strides = [1, 1]} : vector<8x128xf32> to vector<8x32xf32>
    %186 = vector.extract_strided_slice %183 {offsets = [0, 64], sizes = [8, 32], strides = [1, 1]} : vector<8x128xf32> to vector<8x32xf32>
    %187 = vector.extract_strided_slice %183 {offsets = [0, 96], sizes = [8, 32], strides = [1, 1]} : vector<8x128xf32> to vector<8x32xf32>
    %188 = arith.mulf %185, %166 : vector<8x32xf32>
    %189 = arith.mulf %184, %186 : vector<8x32xf32>
    %190 = arith.addf %188, %189 : vector<8x32xf32>
    %191 = math.tanh %190 : vector<8x32xf32>
    %192 = arith.mulf %187, %191 : vector<8x32xf32>
    %c7_i32 = arith.constant 7 : i32
    %c8_i32_44 = arith.constant 8 : i32
    %193 = arith.muli %c7_i32, %c8_i32_44 : i32
    %194 = tpu.assume_multiple %193, 8 : i32
    %195 = arith.index_cast %194 : i32 to index
    %c0_45 = arith.constant 0 : index
    %196 = vector.load %arg8[%195, %c0_45] : memref<64x128xf32, #tpu.memory_space<vmem>>, vector<8x128xf32>
    %197 = arith.truncf %192 : vector<8x32xf32> to vector<8x32xbf16>
    %cst_46 = arith.constant dense<0.000000e+00> : vector<8x128xf32>
    %198 = tpu.matmul %197, %7, %cst_46 {dimension_numbers = #tpu.dot_dimension_numbers<[1], [0], [0], [1], [0, 0, 1, 1], [], []>} : vector<8x32xbf16>, vector<32x128xbf16>, vector<8x128xf32> -> vector<8x128xf32>
    %199 = arith.addf %196, %198 : vector<8x128xf32>
    %200 = arith.mulf %199, %16 : vector<8x128xf32>
    %201 = arith.negf %200 : vector<8x128xf32>
    %202 = math.exp %201 : vector<8x128xf32>
    %cst_47 = arith.constant 1.000000e+00 : f32
    %203 = vector.broadcast %cst_47 : f32 to vector<8x128xf32>
    %204 = arith.addf %203, %202 : vector<8x128xf32>
    %205 = arith.divf %203, %204 : vector<8x128xf32>
    %206 = arith.mulf %19, %205 : vector<8x128xf32>
    %207 = arith.addf %206, %22 : vector<8x128xf32>
    %208 = vector.extract_strided_slice %207 {offsets = [0, 0], sizes = [8, 32], strides = [1, 1]} : vector<8x128xf32> to vector<8x32xf32>
    %209 = vector.extract_strided_slice %207 {offsets = [0, 32], sizes = [8, 32], strides = [1, 1]} : vector<8x128xf32> to vector<8x32xf32>
    %210 = vector.extract_strided_slice %207 {offsets = [0, 64], sizes = [8, 32], strides = [1, 1]} : vector<8x128xf32> to vector<8x32xf32>
    %211 = vector.extract_strided_slice %207 {offsets = [0, 96], sizes = [8, 32], strides = [1, 1]} : vector<8x128xf32> to vector<8x32xf32>
    %212 = arith.mulf %209, %190 : vector<8x32xf32>
    %213 = arith.mulf %208, %210 : vector<8x32xf32>
    %214 = arith.addf %212, %213 : vector<8x32xf32>
    %215 = math.tanh %214 : vector<8x32xf32>
    %216 = arith.mulf %211, %215 : vector<8x32xf32>
    %c8_i32_48 = arith.constant 8 : i32
    %c0_49 = arith.constant 0 : index
    %c0_50 = arith.constant 0 : index
    %217 = vector.load %arg5[%c0_49, %c0_50] : memref<32x4xf32, #tpu.memory_space<vmem>>, vector<32x4xf32>
    %cst_51 = arith.constant dense<0.000000e+00> : vector<8x4xf32>
    %218 = tpu.matmul %216, %217, %cst_51 {dimension_numbers = #tpu.dot_dimension_numbers<[1], [0], [0], [1], [0, 0, 1, 1], [], []>} : vector<8x32xf32>, vector<32x4xf32>, vector<8x4xf32> -> vector<8x4xf32>
    %c0_52 = arith.constant 0 : index
    %c0_53 = arith.constant 0 : index
    %219 = vector.load %arg6[%c0_52, %c0_53] : memref<1x4xf32, #tpu.memory_space<vmem>>, vector<1x4xf32>
    %220 = vector.broadcast %219 : vector<1x4xf32> to vector<8x4xf32>
    %221 = arith.addf %218, %220 : vector<8x4xf32>
    %c0_54 = arith.constant 0 : index
    %c0_55 = arith.constant 0 : index
    %222 = vector.load %arg7[%c0_54, %c0_55] : memref<8x4xf32, #tpu.memory_space<vmem>>, vector<8x4xf32>
    tpu.vector_store %arg7[%c0_54, %c0_55], %221 {strides = array<i32>} : memref<8x4xf32, #tpu.memory_space<vmem>>, vector<8x4xf32>,
    return
  }
  func.func @transform_0(%arg0: i32) -> (i32, i32) {
    %c0_i32 = arith.constant 0 : i32
    %c0_i32_0 = arith.constant 0 : i32
    %c0_i32_1 = arith.constant 0 : i32
    return %c0_i32, %c0_i32_0 : i32, i32
  }
  func.func @transform_1(%arg0: i32) -> (i32, i32) {
    %c0_i32 = arith.constant 0 : i32
    %c0_i32_0 = arith.constant 0 : i32
    %c0_i32_1 = arith.constant 0 : i32
    return %c0_i32, %c0_i32_0 : i32, i32
  }
  func.func @transform_2(%arg0: i32) -> (i32, i32) {
    %c0_i32 = arith.constant 0 : i32
    %c0_i32_0 = arith.constant 0 : i32
    %c0_i32_1 = arith.constant 0 : i32
    return %c0_i32, %c0_i32_0 : i32, i32
  }
  func.func @transform_3(%arg0: i32) -> (i32, i32) {
    %c0_i32 = arith.constant 0 : i32
    %c0_i32_0 = arith.constant 0 : i32
    %c0_i32_1 = arith.constant 0 : i32
    return %c0_i32, %c0_i32_0 : i32, i32
  }
  func.func @transform_4(%arg0: i32) -> (i32, i32) {
    %c0_i32 = arith.constant 0 : i32
    %c0_i32_0 = arith.constant 0 : i32
    %c0_i32_1 = arith.constant 0 : i32
    return %c0_i32, %c0_i32_0 : i32, i32
  }
  func.func @transform_5(%arg0: i32) -> (i32, i32) {
    %c0_i32 = arith.constant 0 : i32
    %c0_i32_0 = arith.constant 0 : i32
    %c0_i32_1 = arith.constant 0 : i32
    return %c0_i32, %c0_i32_0 : i32, i32
  }
  func.func @transform_6(%arg0: i32) -> (i32, i32) {
    %c0_i32 = arith.constant 0 : i32
    %c0_i32_0 = arith.constant 0 : i32
    %c0_i32_1 = arith.constant 0 : i32
    return %c0_i32, %c0_i32_0 : i32, i32
  }
}

</mosaic_0001>

<bundles_post_ra>
// kernel: tpu_custom_call.1
= control target key start
LH: loop header
LB: loop body
LE: loop exit
PB: predicated region body
PF: predicated region fallthrough
CT: control target
= control target key end

     0   :  { %v1081_v0 = vmov 0.0   ;;  %vm1082_vm0 = vmmov 0   ;;  %vm67_vm1 = vcmask 130048   ;;  %v1083_v6 = vmov 0   ;;  %s1086_s7 = smov 32   ;;  %s1331_s1 = inlined_call_operand.vmem [shape: bf16[16,128], index: 1, kind: input, shape index: {}]   ;;  %s1332_s2 = inlined_call_operand.vmem [shape: bf16[32,128], index: 2, kind: input, shape index: {}]   ;;  %s1333_s0 = inlined_call_operand.vmem [shape: bf16[64,16], index: 0, kind: input, shape index: {}]   ;;  %s1334_s3 = inlined_call_operand.vmem [shape: f32[1,128], index: 3, kind: input, shape index: {}]   ;;  %s1335_s4 = inlined_call_operand.vmem [shape: f32[32,4], index: 4, kind: input, shape index: {}]   ;;  %s1336_s5 = inlined_call_operand.vmem [shape: f32[1,4], index: 5, kind: input, shape index: {}]   ;;  %s1337_s6 = inlined_call_operand.vmem [shape: f32[8,4], index: 6, kind: output, shape index: {}]  }
   0x1   :  { %945 = vmatprep.subr.bf16.mxu1 %v1081_v0  ;;  %v1026_v1 = vld [vmem:[%s1331_s1] sm:$0xff]   ;;  %949 = vmatprep.mubr.msk.bf16.mxu1 %vm1082_vm0, %v1081_v0  ;;  %v1131_v2 = vld [vmem:[%s1332_s2 + $0x8] sm:$0xff]   ;;  %v157_v7 = vlaneseq  ;;  %v1084_v14 = vmov 1.0   ;;  %vm177_vm5 = vcmask 261120   ;;  %v1031_v59 = vld [vmem:[%s1333_s0 + $0x10] sm:$0xff]   ;;  %vm866_vm6 = vcmask 31744  }
   0x2   :  { %935 = vmatprep.subr.bf16.mxu0 %v1026_v1  ;;  %v1028_v3 = vld [vmem:[%s1333_s0] sm:$0xff]   ;;  %946 = vmatpush3.bf16.msra.mxu1 %v1131_v2  ;;  %v1029_v4 = vld [vmem:[%s1333_s0 + $0x8] sm:$0xff]   ;;  %v1032_v60 = vld [vmem:[%s1333_s0 + $0x18] sm:$0xff]  }
   0x3   :  { %936 = vmatpush3.bf16.msra.mxu0 %v1026_v1  ;;  %937 = vmatprep.mubr.msk.bf16.mxu0 %vm67_vm1, %v1028_v3  ;;  %v1145_v5 = vld [vmem:[%s1332_s2] sm:$0xff]   ;;  %v158_v8 = vand.u32 127, %v157_v7 }
   0x4   :  { %947 = vmatprep.subr.bf16.mxu1 %v1081_v0  ;;  %961 = vmatprep.subr.bf16.mxu0 %v1081_v0  ;;  %v1170_v11 = vld [vmem:[%s1334_s3] ss:$0 sm:$0xff]  ;;  %s1085_s3 = smov 64  }
   0x5   :  { %vm159_vm2 = vcmp.ge.s32.totalorder %v158_v8, 64  ;;  %vm160_vm3 = vcmp.lt.s32.totalorder %v158_v8, 96 }
   0x6   :  { %938 = vmatmul.mubr.msk.bf16.vlgmr.msra.gmra.mxu0 %vm67_vm1, %v1029_v4  ;;  %948 = vmatpush3.bf16.msra.mxu1 %v1145_v5  ;;  %vm1163_vm4 = vmand %vm159_vm2, %vm160_vm3 }
   0x7   :  { %962 = vmatpush3.bf16.msra.mxu0 %v1131_v2  ;;  %953 = vmatprep.subr.bf16.mxu1 %v1081_v0  ;;  %v1175_v15 = vsel %vm1163_vm4, 2.0, %v1084_v14  ;;  %v1181_v26 = vsel %vm1163_vm4, -1.0, %v1081_v0 }
   0x8   :  { %963 = vmatprep.subr.bf16.mxu0 %v1081_v0  ;;  %941 = vmatprep.mubr.msk.bf16.mxu0 %vm67_vm1, %v1031_v59 }
   0x9   :  { %950 = vmatmul.mubr.bf16.vlgmr.msra.gmra.mxu1 %v1083_v6 }
   0xa   :  { %954 = vmatpush3.bf16.msra.mxu1 %v1131_v2  ;;  %957 = vmatprep.mubr.msk.bf16.mxu1 %vm1082_vm0, %v1081_v0 }
   0xb   :  { %955 = vmatprep.subr.bf16.mxu1 %v1081_v0  ;;  %964 = vmatpush3.bf16.msra.mxu0 %v1145_v5 }
   0xc   :  { %977 = vmatprep.subr.bf16.mxu0 %v1081_v0 }
   0xe   :  { %956 = vmatpush3.bf16.msra.mxu1 %v1145_v5  ;;  %942 = vmatmul.mubr.msk.bf16.gmra.mxu0 %vm67_vm1, %v1032_v60 }
   0xf   :  { %969 = vmatprep.subr.bf16.mxu1 %v1081_v0  ;;  %965 = vmatprep.mubr.msk.bf16.mxu0 %vm1082_vm0, %v1081_v0 }
  0xc6   :  { %v1161_v9 = vpop.f32.mrf.mxu0 }
  0xc7   :  { %v123_v10 = vadd.f32 %v1161_v9, %v1170_v11 }
  0xc8   :  { %v114_v12 = vpop.f32.mrf.mxu0 }
  0xc9   :  { %v115_v13 = vadd.f32 %v1170_v11, %v114_v12  ;;  %v215_v16 = vpop.f32.mrf.mxu1 }
  0xca   :  { %v1196_v39 = vpop.f32.mrf.mxu0 }
  0xcb   :  { %v221_v17 = vadd.f32 %v215_v16, %v115_v13  ;;  %v951_v18 = vpop.f32.mrf.mxu1 }
  0xcc   :  { %v117_v40 = vpop.f32.mrf.mxu0 }
  0xcd   :  { %v222_v19 = vmul.f32 %v221_v17, %v1175_v15  ;;  %v218_v20 = vpop.f32.mrf.mxu1  ;;  %v118_v41 = vadd.f32 %v1170_v11, %v117_v40 }
  0xce   :  { %v1223_v4 = vpop.f32.mrf.mxu0 }
  0xcf   :  { %v884_v21 = vmul.f32 -1.442695, %v222_v19  ;;  %v952_v22 = vpop.f32.mrf.mxu1 }
  0xd0   :  { %v1225_v6 = vpop.f32.mrf.mxu0 }
  0xd1   :  { %1033 = vpow2.f32 %v884_v21 }
  0xd2   :  { %v1227_v7 = vpop.f32.mrf.mxu0 }
  0xd4   :  { %v1229_v8 = vpop.f32.mrf.mxu0 }
  0xde   :  { %v1034_v23 = vpop.eup %1033 }
  0xdf   :  { %v226_v24 = vadd.f32 1.0, %v1034_v23 }
  0xe1   :  { %1035 = vrcp.f32 %v226_v24 }
  0xee   :  { %v1036_v25 = vpop.eup %1035 }
  0xef   :  { %v229_v27 = vmul.f32 %v1036_v25, %v1175_v15 }
  0xf1   :  { %v230_v28 = vadd.f32 %v229_v27, %v1181_v26 }
  0xf3   :  { %233 = vrot.lane.b32.xlu0 %v230_v28, %s1085_s3  ;;  %v231_v31 = vmul.f32 0.0, %v230_v28 }
 0x165   :  { %v234_v29 = vpop.permute.xlu0 %233 }
 0x166   :  { %v236_v30 = vmul.f32 %v234_v29, %v230_v28 }
 0x168   :  { %238 = vrot.lane.b32.xlu0 %v236_v30, %s1086_s7 }
 0x1da   :  { %v239_v32 = vpop.permute.xlu0 %238 }
 0x1db   :  { %v241_v33 = vadd.f32 %v239_v32, %v231_v31 }
 0x1dd   :  { %1037 = vtanh.f32 %v241_v33 }
 0x1ea   :  { %v1038_v34 = vpop.eup %1037 }
 0x1eb   :  { %244 = vrot.lane.b32.xlu1 %v1038_v34, %s1085_s3 }
 0x25d   :  { %v245_v35 = vpop.permute.xlu1 %244 }
 0x25e   :  { %v247_v36 = vmul.f32 %v245_v35, %v230_v28  ;;  %v126_v35 = vadd.f32 %v1196_v39, %v1170_v11 }
 0x260   :  { %v250_v37 = vpack.c.bf16 %v247_v36, %v247_v36 }
 0x262   :  { %252 = vrot.lane.b32.xlu1 %v250_v37, %s1086_s7 }
 0x2d4   :  { %v253_v38 = vpop.permute.xlu1 %252 }
 0x2d5   :  { %958 = vmatmul.mubr.msk.bf16.vlgmr.msra.gmra.mxu1 %vm177_vm5, %v253_v38 }
 0x2d6   :  { %970 = vmatpush3.bf16.msra.mxu1 %v1131_v2  ;;  %973 = vmatprep.mubr.msk.bf16.mxu1 %vm1082_vm0, %v1081_v0 }
 0x2d7   :  { %971 = vmatprep.subr.bf16.mxu1 %v1081_v0 }
 0x2da   :  { %972 = vmatpush3.bf16.msra.mxu1 %v1145_v5 }
 0x2db   :  { %985 = vmatprep.subr.bf16.mxu1 %v1081_v0 }
 0x395   :  { %v291_v42 = vpop.f32.mrf.mxu1 }
 0x396   :  { %v297_v43 = vadd.f32 %v291_v42, %v118_v41 }
 0x397   :  { %v959_v44 = vpop.f32.mrf.mxu1 }
 0x398   :  { %v298_v45 = vmul.f32 %v297_v43, %v1175_v15 }
 0x399   :  { %v294_v46 = vpop.f32.mrf.mxu1 }
 0x39a   :  { %v886_v47 = vmul.f32 -1.442695, %v298_v45 }
 0x39b   :  { %v960_v48 = vpop.f32.mrf.mxu1 }
 0x39c   :  { %1039 = vpow2.f32 %v886_v47 }
 0x3a9   :  { %v1040_v49 = vpop.eup %1039 }
 0x3aa   :  { %v302_v50 = vadd.f32 1.0, %v1040_v49 }
 0x3ac   :  { %1041 = vrcp.f32 %v302_v50 }
 0x3b9   :  { %v1042_v51 = vpop.eup %1041 }
 0x3ba   :  { %v305_v52 = vmul.f32 %v1042_v51, %v1175_v15 }
 0x3bc   :  { %v306_v53 = vadd.f32 %v305_v52, %v1181_v26 }
 0x3be   :  { %309 = vrot.lane.b32.xlu0 %v306_v53, %s1085_s3  ;;  %v307_v56 = vmul.f32 %v306_v53, %v241_v33 }
 0x430   :  { %v310_v54 = vpop.permute.xlu0 %309 }
 0x431   :  { %v312_v55 = vmul.f32 %v310_v54, %v306_v53 }
 0x433   :  { %314 = vrot.lane.b32.xlu1 %v312_v55, %s1086_s7 }
 0x4a5   :  { %v315_v57 = vpop.permute.xlu1 %314 }
 0x4a6   :  { %v317_v58 = vadd.f32 %v315_v57, %v307_v56 }
 0x4a8   :  { %1043 = vtanh.f32 %v317_v58 }
 0x4b5   :  { %v1044_v61 = vpop.eup %1043 }
 0x4b6   :  { %320 = vrot.lane.b32.xlu0 %v1044_v61, %s1085_s3 }
 0x528   :  { %v321_v62 = vpop.permute.xlu0 %320 }
 0x529   :  { %v323_v63 = vmul.f32 %v321_v62, %v306_v53 }
 0x52b   :  { %v326_v1 = vpack.c.bf16 %v323_v63, %v323_v63 }
 0x52d   :  { %328 = vrot.lane.b32.xlu1 %v326_v1, %s1086_s7 }
 0x59f   :  { %v329_v3 = vpop.permute.xlu1 %328 }
 0x5a0   :  { %966 = vmatmul.mubr.msk.bf16.vlgmr.msra.gmra.mxu0 %vm177_vm5, %v329_v3 }
 0x5a1   :  { %978 = vmatpush3.bf16.msra.mxu0 %v1131_v2  ;;  %981 = vmatprep.mubr.msk.bf16.mxu0 %vm1082_vm0, %v1081_v0 }
 0x5a2   :  { %979 = vmatprep.subr.bf16.mxu0 %v1081_v0 }
 0x5a5   :  { %980 = vmatpush3.bf16.msra.mxu0 %v1145_v5 }
 0x5a6   :  { %993 = vmatprep.subr.bf16.mxu0 %v1081_v0 }
 0x660   :  { %v367_v12 = vpop.f32.mrf.mxu0 }
 0x661   :  { %v373_v13 = vadd.f32 %v367_v12, %v123_v10 }
 0x662   :  { %v967_v14 = vpop.f32.mrf.mxu0 }
 0x663   :  { %v374_v16 = vmul.f32 %v373_v13, %v1175_v15 }
 0x664   :  { %v370_v17 = vpop.f32.mrf.mxu0 }
 0x665   :  { %v888_v18 = vmul.f32 -1.442695, %v374_v16 }
 0x666   :  { %v968_v19 = vpop.f32.mrf.mxu0 }
 0x667   :  { %1045 = vpow2.f32 %v888_v18 }
 0x674   :  { %v1046_v20 = vpop.eup %1045 }
 0x675   :  { %v378_v21 = vadd.f32 1.0, %v1046_v20 }
 0x677   :  { %1047 = vrcp.f32 %v378_v21 }
 0x684   :  { %v1048_v22 = vpop.eup %1047 }
 0x685   :  { %v381_v23 = vmul.f32 %v1048_v22, %v1175_v15 }
 0x687   :  { %v382_v24 = vadd.f32 %v381_v23, %v1181_v26 }
 0x689   :  { %385 = vrot.lane.b32.xlu0 %v382_v24, %s1085_s3  ;;  %v383_v27 = vmul.f32 %v382_v24, %v317_v58  ;;  %v131_v58 = vadd.f32 %v1170_v11, %v1225_v6 }
 0x6fb   :  { %v386_v9 = vpop.permute.xlu0 %385 }
 0x6fc   :  { %v388_v25 = vmul.f32 %v386_v9, %v382_v24 }
 0x6fe   :  { %390 = vrot.lane.b32.xlu1 %v388_v25, %s1086_s7  ;;  %v134_v25 = vadd.f32 %v1170_v11, %v1229_v8 }
 0x770   :  { %v391_v28 = vpop.permute.xlu1 %390 }
 0x771   :  { %v393_v29 = vadd.f32 %v391_v28, %v383_v27 }
 0x773   :  { %1049 = vtanh.f32 %v393_v29 }
 0x780   :  { %v1050_v30 = vpop.eup %1049 }
 0x781   :  { %396 = vrot.lane.b32.xlu0 %v1050_v30, %s1085_s3 }
 0x7f3   :  { %v397_v31 = vpop.permute.xlu0 %396 }
 0x7f4   :  { %v399_v32 = vmul.f32 %v397_v31, %v382_v24 }
 0x7f6   :  { %v402_v33 = vpack.c.bf16 %v399_v32, %v399_v32 }
 0x7f8   :  { %404 = vrot.lane.b32.xlu1 %v402_v33, %s1086_s7 }
 0x86a   :  { %v405_v34 = vpop.permute.xlu1 %404 }
 0x86b   :  { %974 = vmatmul.mubr.msk.bf16.vlgmr.msra.gmra.mxu1 %vm177_vm5, %v405_v34 }
 0x86c   :  { %986 = vmatpush3.bf16.msra.mxu1 %v1131_v2  ;;  %989 = vmatprep.mubr.msk.bf16.mxu1 %vm1082_vm0, %v1081_v0 }
 0x86d   :  { %987 = vmatprep.subr.bf16.mxu1 %v1081_v0 }
 0x870   :  { %988 = vmatpush3.bf16.msra.mxu1 %v1145_v5 }
 0x871   :  { %1001 = vmatprep.subr.bf16.mxu1 %v1081_v0 }
 0x92b   :  { %v443_v36 = vpop.f32.mrf.mxu1 }
 0x92c   :  { %v449_v37 = vadd.f32 %v443_v36, %v126_v35 }
 0x92d   :  { %v975_v38 = vpop.f32.mrf.mxu1 }
 0x92e   :  { %v450_v40 = vmul.f32 %v449_v37, %v1175_v15 }
 0x92f   :  { %v446_v41 = vpop.f32.mrf.mxu1 }
 0x930   :  { %v890_v42 = vmul.f32 -1.442695, %v450_v40 }
 0x931   :  { %v976_v43 = vpop.f32.mrf.mxu1 }
 0x932   :  { %1051 = vpow2.f32 %v890_v42 }
 0x93f   :  { %v1052_v44 = vpop.eup %1051 }
 0x940   :  { %v454_v45 = vadd.f32 1.0, %v1052_v44 }
 0x942   :  { %1053 = vrcp.f32 %v454_v45 }
 0x94f   :  { %v1054_v46 = vpop.eup %1053 }
 0x950   :  { %v457_v47 = vmul.f32 %v1054_v46, %v1175_v15 }
 0x952   :  { %v458_v48 = vadd.f32 %v457_v47, %v1181_v26  ;;  %v139_v47 = vadd.f32 %v1223_v4, %v1170_v11 }
 0x954   :  { %461 = vrot.lane.b32.xlu0 %v458_v48, %s1085_s3  ;;  %v459_v50 = vmul.f32 %v458_v48, %v393_v29 }
 0x9c6   :  { %v462_v39 = vpop.permute.xlu0 %461 }
 0x9c7   :  { %v464_v49 = vmul.f32 %v462_v39, %v458_v48 }
 0x9c9   :  { %466 = vrot.lane.b32.xlu1 %v464_v49, %s1086_s7 }
 0xa3b   :  { %v467_v51 = vpop.permute.xlu1 %466 }
 0xa3c   :  { %v469_v52 = vadd.f32 %v467_v51, %v459_v50 }
 0xa3e   :  { %1055 = vtanh.f32 %v469_v52 }
 0xa4b   :  { %v1056_v53 = vpop.eup %1055 }
 0xa4c   :  { %472 = vrot.lane.b32.xlu0 %v1056_v53, %s1085_s3 }
 0xabe   :  { %v473_v54 = vpop.permute.xlu0 %472 }
 0xabf   :  { %v475_v55 = vmul.f32 %v473_v54, %v458_v48 }
 0xac1   :  { %v478_v56 = vpack.c.bf16 %v475_v55, %v475_v55 }
 0xac3   :  { %480 = vrot.lane.b32.xlu1 %v478_v56, %s1086_s7 }
 0xb35   :  { %v481_v57 = vpop.permute.xlu1 %480 }
 0xb36   :  { %982 = vmatmul.mubr.msk.bf16.vlgmr.msra.gmra.mxu0 %vm177_vm5, %v481_v57 }
 0xb37   :  { %994 = vmatpush3.bf16.msra.mxu0 %v1131_v2  ;;  %997 = vmatprep.mubr.msk.bf16.mxu0 %vm1082_vm0, %v1081_v0 }
 0xb38   :  { %995 = vmatprep.subr.bf16.mxu0 %v1081_v0 }
 0xb3b   :  { %996 = vmatpush3.bf16.msra.mxu0 %v1145_v5 }
 0xb3c   :  { %1009 = vmatprep.subr.mxu0 %v1081_v0 }
 0xbf6   :  { %v519_v59 = vpop.f32.mrf.mxu0 }
 0xbf7   :  { %v525_v60 = vadd.f32 %v519_v59, %v131_v58 }
 0xbf8   :  { %v983_v61 = vpop.f32.mrf.mxu0 }
 0xbf9   :  { %v526_v62 = vmul.f32 %v525_v60, %v1175_v15 }
 0xbfa   :  { %v522_v63 = vpop.f32.mrf.mxu0 }
 0xbfb   :  { %v892_v1 = vmul.f32 -1.442695, %v526_v62 }
 0xbfc   :  { %v984_v3 = vpop.f32.mrf.mxu0 }
 0xbfd   :  { %1057 = vpow2.f32 %v892_v1 }
 0xc0a   :  { %v1058_v10 = vpop.eup %1057 }
 0xc0b   :  { %v530_v12 = vadd.f32 1.0, %v1058_v10 }
 0xc0d   :  { %1059 = vrcp.f32 %v530_v12 }
 0xc1a   :  { %v1060_v13 = vpop.eup %1059 }
 0xc1b   :  { %v533_v14 = vmul.f32 %v1060_v13, %v1175_v15  ;;  %v142_v13 = vadd.f32 %v1227_v7, %v1170_v11 }
 0xc1d   :  { %v534_v16 = vadd.f32 %v533_v14, %v1181_v26 }
 0xc1f   :  { %537 = vrot.lane.b32.xlu0 %v534_v16, %s1085_s3  ;;  %v535_v18 = vmul.f32 %v534_v16, %v469_v52 }
 0xc91   :  { %v538_v6 = vpop.permute.xlu0 %537 }
 0xc92   :  { %v540_v17 = vmul.f32 %v538_v6, %v534_v16 }
 0xc94   :  { %542 = vrot.lane.b32.xlu1 %v540_v17, %s1086_s7 }
 0xd06   :  { %v543_v19 = vpop.permute.xlu1 %542 }
 0xd07   :  { %v545_v20 = vadd.f32 %v543_v19, %v535_v18 }
 0xd09   :  { %1061 = vtanh.f32 %v545_v20 }
 0xd16   :  { %v1062_v21 = vpop.eup %1061 }
 0xd17   :  { %548 = vrot.lane.b32.xlu0 %v1062_v21, %s1085_s3 }
 0xd89   :  { %v549_v22 = vpop.permute.xlu0 %548 }
 0xd8a   :  { %v551_v23 = vmul.f32 %v549_v22, %v534_v16 }
 0xd8c   :  { %v554_v24 = vpack.c.bf16 %v551_v23, %v551_v23 }
 0xd8e   :  { %556 = vrot.lane.b32.xlu1 %v554_v24, %s1086_s7 }
 0xe00   :  { %v557_v9 = vpop.permute.xlu1 %556 }
 0xe01   :  { %990 = vmatmul.mubr.msk.bf16.vlgmr.msra.gmra.mxu1 %vm177_vm5, %v557_v9 }
 0xe02   :  { %1002 = vmatpush3.bf16.msra.mxu1 %v1131_v2  ;;  %1005 = vmatprep.mubr.msk.bf16.mxu1 %vm1082_vm0, %v1081_v0 }
 0xe03   :  { %1003 = vmatprep.subr.bf16.mxu1 %v1081_v0 }
 0xe06   :  { %1004 = vmatpush3.bf16.msra.mxu1 %v1145_v5 }
 0xec1   :  { %v595_v27 = vpop.f32.mrf.mxu1 }
 0xec2   :  { %v601_v28 = vadd.f32 %v595_v27, %v134_v25 }
 0xec3   :  { %v991_v29 = vpop.f32.mrf.mxu1 }
 0xec4   :  { %v602_v30 = vmul.f32 %v601_v28, %v1175_v15  ;;  %v783_v29 = vld [vmem:[%s1335_s4 + $0x18] sm:$0xff] }
 0xec5   :  { %v598_v31 = vpop.f32.mrf.mxu1 }
 0xec6   :  { %v894_v32 = vmul.f32 -1.442695, %v602_v30  ;;  %v780_v30 = vld [vmem:[%s1335_s4] sm:$0xff] }
 0xec7   :  { %v992_v33 = vpop.f32.mrf.mxu1 }
 0xec8   :  { %1063 = vpow2.f32 %v894_v32 }
 0xed5   :  { %v1064_v2 = vpop.eup %1063 }
 0xed6   :  { %v606_v34 = vadd.f32 1.0, %v1064_v2 }
 0xed8   :  { %1065 = vrcp.f32 %v606_v34  ;;  %v899_v34 = vld [vmem:[%s1336_s5] ss:$0 sm:$0xff] }
 0xee5   :  { %v1066_v35 = vpop.eup %1065 }
 0xee6   :  { %v609_v36 = vmul.f32 %v1066_v35, %v1175_v15 }
 0xee8   :  { %v610_v5 = vadd.f32 %v609_v36, %v1181_v26 }
 0xeea   :  { %613 = vrot.lane.b32.xlu0 %v610_v5, %s1085_s3  ;;  %v611_v38 = vmul.f32 %v610_v5, %v545_v20 }
 0xf5c   :  { %v614_v8 = vpop.permute.xlu0 %613 }
 0xf5d   :  { %v616_v37 = vmul.f32 %v614_v8, %v610_v5 }
 0xf5f   :  { %618 = vrot.lane.b32.xlu1 %v616_v37, %s1086_s7 }
 0xfd1   :  { %v619_v40 = vpop.permute.xlu1 %618 }
 0xfd2   :  { %v621_v41 = vadd.f32 %v619_v40, %v611_v38 }
 0xfd4   :  { %1067 = vtanh.f32 %v621_v41 }
 0xfe1   :  { %v1068_v42 = vpop.eup %1067 }
 0xfe2   :  { %624 = vrot.lane.b32.xlu0 %v1068_v42, %s1085_s3 }
0x1054   :  { %v625_v43 = vpop.permute.xlu0 %624 }
0x1055   :  { %v627_v44 = vmul.f32 %v625_v43, %v610_v5 }
0x1057   :  { %v630_v45 = vpack.c.bf16 %v627_v44, %v627_v44 }
0x1059   :  { %632 = vrot.lane.b32.xlu1 %v630_v45, %s1086_s7 }
0x10cb   :  { %v633_v46 = vpop.permute.xlu1 %632 }
0x10cc   :  { %998 = vmatmul.mubr.msk.bf16.vlgmr.msra.gmra.mxu0 %vm177_vm5, %v633_v46 }
0x10cd   :  { %1017 = vmatprep.mubr.msk.f32.mxu0 %vm1082_vm0, %v1081_v0  ;;  %1010 = vmatpush3.msra.mxu0 %v783_v29 }
0x10ce   :  { %1011 = vmatprep.subr.mxu0 %v1081_v0 }
0x118c   :  { %v671_v48 = vpop.f32.mrf.mxu0 }
0x118d   :  { %v677_v39 = vadd.f32 %v671_v48, %v139_v47 }
0x118e   :  { %v999_v49 = vpop.f32.mrf.mxu0 }
0x118f   :  { %v678_v50 = vmul.f32 %v677_v39, %v1175_v15 }
0x1190   :  { %v674_v51 = vpop.f32.mrf.mxu0 }
0x1191   :  { %v896_v52 = vmul.f32 -1.442695, %v678_v50 }
0x1192   :  { %v1000_v53 = vpop.f32.mrf.mxu0 }
0x1193   :  { %1069 = vpow2.f32 %v896_v52 }
0x11a0   :  { %v1070_v54 = vpop.eup %1069 }
0x11a1   :  { %v682_v55 = vadd.f32 1.0, %v1070_v54 }
0x11a3   :  { %1071 = vrcp.f32 %v682_v55 }
0x11b0   :  { %v1072_v56 = vpop.eup %1071 }
0x11b1   :  { %v685_v57 = vmul.f32 %v1072_v56, %v1175_v15 }
0x11b3   :  { %v686_v58 = vadd.f32 %v685_v57, %v1181_v26 }
0x11b5   :  { %689 = vrot.lane.b32.xlu0 %v686_v58, %s1085_s3  ;;  %v687_v60 = vmul.f32 %v686_v58, %v621_v41 }
0x1227   :  { %v690_v4 = vpop.permute.xlu0 %689 }
0x1228   :  { %v692_v59 = vmul.f32 %v690_v4, %v686_v58 }
0x122a   :  { %694 = vrot.lane.b32.xlu1 %v692_v59, %s1086_s7 }
0x129c   :  { %v695_v61 = vpop.permute.xlu1 %694 }
0x129d   :  { %v697_v62 = vadd.f32 %v695_v61, %v687_v60 }
0x129f   :  { %1073 = vtanh.f32 %v697_v62 }
0x12ac   :  { %v1074_v63 = vpop.eup %1073 }
0x12ad   :  { %700 = vrot.lane.b32.xlu0 %v1074_v63, %s1085_s3 }
0x131f   :  { %v701_v1 = vpop.permute.xlu0 %700 }
0x1320   :  { %v703_v3 = vmul.f32 %v701_v1, %v686_v58 }
0x1322   :  { %v706_v10 = vpack.c.bf16 %v703_v3, %v703_v3 }
0x1324   :  { %708 = vrot.lane.b32.xlu1 %v706_v10, %s1086_s7 }
0x1396   :  { %v709_v12 = vpop.permute.xlu1 %708 }
0x1397   :  { %1006 = vmatmul.mubr.msk.bf16.vlgmr.msra.gmra.mxu1 %vm177_vm5, %v709_v12 }
0x1457   :  { %v747_v14 = vpop.f32.mrf.mxu1 }
0x1458   :  { %v753_v16 = vadd.f32 %v747_v14, %v142_v13 }
0x1459   :  { %v1007_v6 = vpop.f32.mrf.mxu1 }
0x145a   :  { %v754_v17 = vmul.f32 %v753_v16, %v1175_v15 }
0x145b   :  { %v750_v18 = vpop.f32.mrf.mxu1 }
0x145c   :  { %v898_v19 = vmul.f32 -1.442695, %v754_v17 }
0x145d   :  { %v1008_v20 = vpop.f32.mrf.mxu1 }
0x145e   :  { %1075 = vpow2.f32 %v898_v19 }
0x146b   :  { %v1076_v21 = vpop.eup %1075 }
0x146c   :  { %v758_v22 = vadd.f32 1.0, %v1076_v21 }
0x146e   :  { %1077 = vrcp.f32 %v758_v22 }
0x147b   :  { %v1078_v23 = vpop.eup %1077 }
0x147c   :  { %v761_v24 = vmul.f32 %v1078_v23, %v1175_v15  ;;  %v782_v15 = vld [vmem:[%s1335_s4 + $0x10] sm:$0xff] }
0x147d   :  { %1012 = vmatpush3.msra.mxu0 %v782_v15 }
0x147e   :  { %v762_v9 = vadd.f32 %v761_v24, %v1181_v26  ;;  %v781_v26 = vld [vmem:[%s1335_s4 + $0x8] sm:$0xff]  ;;  %1013 = vmatprep.subr.mxu0 %v1081_v0 }
0x147f   :  { %1014 = vmatpush3.msra.mxu0 %v781_v26 }
0x1480   :  { %765 = vrot.lane.b32.xlu0 %v762_v9, %s1085_s3  ;;  %v763_v25 = vmul.f32 %v762_v9, %v697_v62  ;;  %1015 = vmatprep.subr.mxu0 %v1081_v0 }
0x1481   :  { %1016 = vmatpush3.msra.mxu0 %v780_v30 }
0x14f2   :  { %v766_v11 = vpop.permute.xlu0 %765 }
0x14f3   :  { %v768_v7 = vmul.f32 %v766_v11, %v762_v9 }
0x14f5   :  { %770 = vrot.lane.b32.xlu1 %v768_v7, %s1086_s7 }
0x1567   :  { %v771_v27 = vpop.permute.xlu1 %770 }
0x1568   :  { %v773_v28 = vadd.f32 %v771_v27, %v763_v25 }
0x156a   :  { %1079 = vtanh.f32 %v773_v28 }
0x1577   :  { %v1080_v31 = vpop.eup %1079 }
0x1578   :  { %776 = vrot.lane.b32.xlu0 %v1080_v31, %s1085_s3 }
0x15ea   :  { %v777_v32 = vpop.permute.xlu0 %776 }
0x15eb   :  { %v779_v33 = vmul.f32 %v777_v32, %v762_v9 }
0x15ed   :  { %792 = vrot.lane.b32.xlu1 %v779_v33, %s1086_s7 }
0x165f   :  { %v793_v2 = vpop.permute.xlu1 %792 }
0x1660   :  { %1018 = vmatmul.mubr.msk.f32.vlgmr.msra.gmra.mxu0 %vm177_vm5, %v793_v2 }
0x1720   :  { %v862_v35 = vpop.f32.mrf.mxu0 }
0x1721   :  { %v863_v36 = vadd.f32 %v899_v34, %v862_v35 }
0x1722   :  { %v1019_v5 = vpop.f32.mrf.mxu0 }
0x1723   :  { %867 = vst.msk [vmem:[%s1337_s6] sm:$0xff] %vm866_vm6, %v863_v36 }

</bundles_post_ra>
